<compile_context>
chip_gen: v7x
topology: tpu7x:2x2x1
jax: 0.10.0
libtpu: 0.0.40
codegen_flags: <defaults>
</compile_context>

<pallas_src>
import jax
import jax.numpy as jnp
from jax.experimental import pallas as pl
from jax.experimental.pallas import tpu as pltpu

_LANE = 128


def _round_up(a, b):
    return ((a + b - 1) // b) * b


# ---------------------------------------------------------------------------
# Kernels
# ---------------------------------------------------------------------------
def _linear_softmax_kernel(x_ref, wt_ref, b_ref, o_ref):
    # x_ref : (TM, K)      f32  -- one row tile per grid step (double-buffered)
    # wt_ref: (K, N_pad)   bf16 -- resident, single-buffered across the grid
    # b_ref : (1, N_pad)   f32  -- resident; padded lanes = -1e30
    # o_ref : (TM, N_pad)  f32  -- lane-dense output tile
    logits = jnp.dot(x_ref[...].astype(jnp.bfloat16), wt_ref[...],
                     preferred_element_type=jnp.float32)
    logits = logits + b_ref[...]                      # broadcast (1,N) over (TM,N)
    # Naive softmax (no max subtraction) to match the reference implementation.
    e = jnp.exp(logits)                               # EUP; padded lanes -> 0
    inv = pl.reciprocal(jnp.sum(e, axis=-1, keepdims=True), approx=False)
    o_ref[...] = (e * inv).astype(o_ref.dtype)


def _linear_softmax_kernel_ktiled(x_ref, wt_ref, b_ref, o_ref, acc_ref):
    # Same computation with in_features split over grid axis 1 ("arbitrary")
    # and an f32 VMEM accumulator; softmax finalize on the last K step.
    k = pl.program_id(1)

    @pl.when(k == 0)
    def _init():
        acc_ref[...] = jnp.zeros_like(acc_ref)

    acc_ref[...] += jnp.dot(x_ref[...].astype(jnp.bfloat16), wt_ref[...],
                            preferred_element_type=jnp.float32)

    @pl.when(k == pl.num_programs(1) - 1)
    def _finalize():
        logits = acc_ref[...] + b_ref[...]
        e = jnp.exp(logits)
        inv = pl.reciprocal(jnp.sum(e, axis=-1, keepdims=True), approx=False)
        o_ref[...] = (e * inv).astype(o_ref.dtype)


# ---------------------------------------------------------------------------
# Wrapper
# ---------------------------------------------------------------------------
def net_forward(x, weight, bias, *, tm=512, tk=512,
                max_resident_weight_bytes=32 << 20, force_k_grid=False):
    """forward(x) = naive_softmax(x @ weight.T + bias).

    x: (N, in_features); weight: (out_features, in_features); bias: (out_features,)
    """
    n, in_features = x.shape
    out_features, in_f2 = weight.shape
    assert in_f2 == in_features, "weight must be (out_features, in_features)"

    n_pad = _round_up(out_features, _LANE)

    # One-time weight prep: (K, N) MXU layout, bf16, lane-padded with zeros.
    wt = jnp.pad(weight.T.astype(jnp.bfloat16),
                 ((0, 0), (0, n_pad - out_features)))
    # Padded bias lanes get a large negative value so exp() contributes ~0.
    b2d = jnp.pad(bias.reshape(1, out_features).astype(jnp.float32),
                  ((0, 0), (0, n_pad - out_features)),
                  constant_values=-1e30)

    # Row tiling: balanced multiples of 8; >= 2 tiles when n > 8 so the
    # "parallel" row axis can be split across both v7x TensorCores.
    if n <= 8:
        tm_eff = n
    else:
        tm_cap = max(8, min(tm, _round_up(pl.cdiv(n, 2), 8)))
        steps = pl.cdiv(n, tm_cap)
        tm_eff = _round_up(pl.cdiv(n, steps), 8)
    grid_m = pl.cdiv(n, tm_eff)

    x_itemsize = x.dtype.itemsize
    w_bytes = wt.size * wt.dtype.itemsize
    use_k_grid = force_k_grid or (w_bytes > max_resident_weight_bytes)

    cost = pl.CostEstimate(
        flops=2 * n * in_features * n_pad,
        transcendentals=n * n_pad,
        bytes_accessed=(n * in_features * x_itemsize + w_bytes
                        + 4 * n_pad + 4 * n * n_pad),
    )

    if not use_k_grid:
        # Weight-resident path.
        vmem_bytes = (2 * tm_eff * in_features * x_itemsize   # x tiles (dbl-buffered)
                      + 2 * tm_eff * n_pad * 4                # out tiles (dbl-buffered)
                      + w_bytes                               # resident bf16 weight (x1)
                      + 2 * n_pad * 4)                        # bias
        vmem_limit = min(int(vmem_bytes * 1.5) + (1 << 20), 100 << 20)

        out_padded = pl.pallas_call(
            _linear_softmax_kernel,
            out_shape=jax.ShapeDtypeStruct((n, n_pad), jnp.float32),
            grid_spec=pltpu.PrefetchScalarGridSpec(
                num_scalar_prefetch=0,
                grid=(grid_m,),
                in_specs=[
                    # x: new row tile per grid step (auto double-buffered).
                    pl.BlockSpec((tm_eff, in_features), lambda i: (i, 0)),
                    # weight / bias: constant block index -> keep a SINGLE copy.
                    pl.BlockSpec((in_features, n_pad), lambda i: (0, 0),
                                 pipeline_mode=pl.Buffered(1)),
                    pl.BlockSpec((1, n_pad), lambda i: (0, 0),
                                 pipeline_mode=pl.Buffered(1)),
                ],
                out_specs=pl.BlockSpec((tm_eff, n_pad), lambda i: (i, 0)),
            ),
            compiler_params=pltpu.CompilerParams(
                dimension_semantics=("parallel",),
                vmem_limit_bytes=vmem_limit,
            ),
            cost_estimate=cost,
        )(x, wt, b2d)
    else:
        # K-tiled fallback: weight too large to keep resident in VMEM
        # (mandatory for big layers on v7x's 64 MiB per-TC VMEM).
        tk_eff = min(tk, _round_up(in_features, _LANE))
        k_pad = _round_up(in_features, tk_eff)
        if k_pad != in_features:        # zero-pad K so OOB never accumulates
            x_in = jnp.pad(x, ((0, 0), (0, k_pad - in_features)))
            wt_in = jnp.pad(wt, ((0, k_pad - in_features), (0, 0)))
        else:
            x_in, wt_in = x, wt
        grid_k = k_pad // tk_eff

        vmem_bytes = (2 * tm_eff * tk_eff * x_itemsize        # x tiles
                      + 2 * tk_eff * n_pad * 2                # bf16 weight tiles
                      + 2 * tm_eff * n_pad * 4                # out tiles
                      + tm_eff * n_pad * 4                    # f32 accumulator
                      + 2 * n_pad * 4)                        # bias
        vmem_limit = min(int(vmem_bytes * 1.5) + (1 << 20), 100 << 20)

        out_padded = pl.pallas_call(
            _linear_softmax_kernel_ktiled,
            out_shape=jax.ShapeDtypeStruct((n, n_pad), jnp.float32),
            grid_spec=pltpu.PrefetchScalarGridSpec(
                num_scalar_prefetch=0,
                grid=(grid_m, grid_k),
                in_specs=[
                    pl.BlockSpec((tm_eff, tk_eff), lambda i, k: (i, k)),
                    pl.BlockSpec((tk_eff, n_pad), lambda i, k: (k, 0)),
                    pl.BlockSpec((1, n_pad), lambda i, k: (0, 0),
                                 pipeline_mode=pl.Buffered(1)),
                ],
                out_specs=pl.BlockSpec((tm_eff, n_pad), lambda i, k: (i, 0)),
                scratch_shapes=[pltpu.VMEM((tm_eff, n_pad), jnp.float32)],
            ),
            compiler_params=pltpu.CompilerParams(
                dimension_semantics=("parallel", "arbitrary"),
                vmem_limit_bytes=vmem_limit,
            ),
            cost_estimate=cost,
        )(x_in, wt_in, b2d)

    # Drop the lane padding (tiny slice; output stores in-kernel stay lane-dense).
    return out_padded[:, :out_features]


# ---------------------------------------------------------------------------
# Test
# ---------------------------------------------------------------------------
if __name__ == "__main__":
    key = jax.random.PRNGKey(0)
    key_main, key_k = jax.random.split(key, 2)

    def ref_forward(x, w, b):
        logits = x @ w.T + b
        e = jnp.exp(logits)
        return e / jnp.sum(e, axis=-1, keepdims=True)

    def make_inputs(k, n, in_f, out_f):
        kx, kw, kb = jax.random.split(k, 3)
        x = jax.random.normal(kx, (n, in_f), dtype=jnp.float32)
        bound = 1.0 / jnp.sqrt(jnp.float32(in_f))
        w = jax.random.uniform(kw, (out_f, in_f), minval=-bound, maxval=bound,
                               dtype=jnp.float32)
        b = jax.random.uniform(kb, (out_f,), minval=-bound, maxval=bound,
                               dtype=jnp.float32)
        return x, w, b

    # --- main test: resident-weight path at the module's toy shape ---
    N, IN_FEATURES, OUT_FEATURES = 8, 32, 16
    x, w, b = make_inputs(key_main, N, IN_FEATURES, OUT_FEATURES)
    out = jax.block_until_ready(net_forward(x, w, b))
    ref = ref_forward(x, w, b)
    assert out.shape == (N, OUT_FEATURES)
    # Tolerance relaxed for the bf16 matmul (f32-accumulated) MXU path.
    assert jnp.allclose(out, ref, atol=2e-2, rtol=2e-2), "resident-path mismatch"
    assert jnp.allclose(jnp.sum(out, axis=-1), 1.0, atol=1e-3)

    # --- secondary test: K-tiled fallback path, forced at a small shape ---
    x2, w2, b2 = make_inputs(key_k, 16, 256, 16)
    out2 = jax.block_until_ready(
        net_forward(x2, w2, b2, tk=128, force_k_grid=True))
    ref2 = ref_forward(x2, w2, b2)
    assert out2.shape == (16, 16)
    assert jnp.allclose(out2, ref2, atol=2e-2, rtol=2e-2), "k-tiled-path mismatch"
    assert jnp.allclose(jnp.sum(out2, axis=-1), 1.0, atol=1e-3)

    print("KERNEL_OK")
</pallas_src>

<mosaic_0001>
module attributes {stable_mosaic.version = 11 : i64} {
  func.func @_linear_softmax_kernel(%arg0: i32, %arg1: memref<8x32xf32, #tpu.memory_space<vmem>>, %arg2: memref<32x128xbf16, #tpu.memory_space<vmem>>, %arg3: memref<1x128xf32, #tpu.memory_space<vmem>>, %arg4: memref<8x128xf32, #tpu.memory_space<vmem>>) attributes {dimension_semantics = [#tpu.dimension_semantics<parallel>], iteration_bounds = array<i64: 1>, scalar_prefetch = 0 : i64, scratch_operands = 0 : i64, tpu.core_type = #tpu.core_type<tc>, window_params = [{transform_indices = @transform_0, window_bounds = array<i64: 8, 32>}, {pipeline_mode = #tpu.pipeline_mode<synchronous>, transform_indices = @transform_1, window_bounds = array<i64: 32, 128>}, {pipeline_mode = #tpu.pipeline_mode<synchronous>, transform_indices = @transform_2, window_bounds = array<i64: 1, 128>}, {transform_indices = @transform_3, window_bounds = array<i64: 8, 128>}]} {
    %c0 = arith.constant 0 : index
    %c0_0 = arith.constant 0 : index
    %0 = vector.load %arg1[%c0, %c0_0] : memref<8x32xf32, #tpu.memory_space<vmem>>, vector<8x32xf32>
    %1 = arith.truncf %0 : vector<8x32xf32> to vector<8x32xbf16>
    %c0_1 = arith.constant 0 : index
    %c0_2 = arith.constant 0 : index
    %2 = vector.load %arg2[%c0_1, %c0_2] : memref<32x128xbf16, #tpu.memory_space<vmem>>, vector<32x128xbf16>
    %cst = arith.constant dense<0.000000e+00> : vector<8x128xf32>
    %3 = tpu.matmul %1, %2, %cst {dimension_numbers = #tpu.dot_dimension_numbers<[1], [0], [0], [1], [0, 0, 1, 1], [], []>} : vector<8x32xbf16>, vector<32x128xbf16>, vector<8x128xf32> -> vector<8x128xf32>
    %c0_3 = arith.constant 0 : index
    %c0_4 = arith.constant 0 : index
    %4 = vector.load %arg3[%c0_3, %c0_4] : memref<1x128xf32, #tpu.memory_space<vmem>>, vector<1x128xf32>
    %5 = vector.broadcast %4 : vector<1x128xf32> to vector<8x128xf32>
    %6 = arith.addf %3, %5 : vector<8x128xf32>
    %7 = math.exp %6 : vector<8x128xf32>
    %cst_5 = arith.constant dense<0.000000e+00> : vector<8xf32>
    %8 = vector.multi_reduction <add>, %7, %cst_5 [1] : vector<8x128xf32> to vector<8xf32>
    %9 = vector.shape_cast %8 : vector<8xf32> to vector<8x1xf32>
    %10 = tpu.reciprocal %9 : vector<8x1xf32> -> vector<8x1xf32>
    %11 = vector.broadcast %10 : vector<8x1xf32> to vector<8x128xf32>
    %12 = arith.mulf %7, %11 : vector<8x128xf32>
    %c0_6 = arith.constant 0 : index
    %c0_7 = arith.constant 0 : index
    %13 = vector.load %arg4[%c0_6, %c0_7] : memref<8x128xf32, #tpu.memory_space<vmem>>, vector<8x128xf32>
    tpu.vector_store %arg4[%c0_6, %c0_7], %12 {strides = array<i32>} : memref<8x128xf32, #tpu.memory_space<vmem>>, vector<8x128xf32>,
    return
  }
  func.func @transform_0(%arg0: i32) -> (i32, i32) {
    %c0_i32 = arith.constant 0 : i32
    %c0_i32_0 = arith.constant 0 : i32
    return %arg0, %c0_i32 : i32, i32
  }
  func.func @transform_1(%arg0: i32) -> (i32, i32) {
    %c0_i32 = arith.constant 0 : i32
    %c0_i32_0 = arith.constant 0 : i32
    %c0_i32_1 = arith.constant 0 : i32
    return %c0_i32, %c0_i32_0 : i32, i32
  }
  func.func @transform_2(%arg0: i32) -> (i32, i32) {
    %c0_i32 = arith.constant 0 : i32
    %c0_i32_0 = arith.constant 0 : i32
    %c0_i32_1 = arith.constant 0 : i32
    return %c0_i32, %c0_i32_0 : i32, i32
  }
  func.func @transform_3(%arg0: i32) -> (i32, i32) {
    %c0_i32 = arith.constant 0 : i32
    %c0_i32_0 = arith.constant 0 : i32
    return %arg0, %c0_i32 : i32, i32
  }
}

</mosaic_0001>

<bundles_post_ra>
// kernel: tpu_custom_call.1
= control target key start
LH: loop header
LB: loop body
LE: loop exit
PB: predicated region body
PF: predicated region fallthrough
CT: control target
= control target key end

     0   :  { %8 = vsyncpa [#allocation3], 0  ;;  %s307_s0 = inlined_call_operand.hbm [shape: f32[8,32], index: 0, kind: input, shape index: {}]   ;;  %s308_s1 = inlined_call_operand.hbm [shape: bf16[32,128], index: 1, kind: input, shape index: {}]   ;;  %s309_s2 = inlined_call_operand.vmem [shape: f32[1,128], index: 2, kind: input, shape index: {}]   ;;  %s310_s3 = inlined_call_operand.hbm [shape: f32[8,128], index: 3, kind: output, shape index: {}]  }
   0x1   :  { %9 = vsyncpa [#allocation6], 0 }
   0x2   :  { %10 = vsyncpa [#allocation4], 0  ;;  %s234_s12 = smov [#allocation2]   ;;  %s235_s14 = smov [#allocation5]  }
   0x3   :  { %s17_s13 = sshll.u32 %s234_s12, 4  ;;  %s26_s15 = sshll.u32 %s235_s14, 4  ;;  %s18_s13 = int_to_ptr.vmem [resolvable:$true] %s17_s13  ;;  %s261_s15 = int_to_ptr.vmem [resolvable:$true] %s26_s15 }
   0x4   :  { %s162_s18 = scalar_lea.hbm %s307_s0, 128 }
   0x5   :  { %p163_p0 = scmp.ne.s32.totalorder %s307_s0, %s162_s18  ;;  %p166_p1 = scmp.lt.u32.totalorder %s162_s18, %s307_s0 }
   0x7   :  { %p168_p2 = pnand %p166_p1, %p163_p0 }
   0x9   :  { %171 = shalt.err (!%p168_p2)
}
   0xa   :  { %s172_s23 = scalar_lea.vmem %s18_s13, 128  ;;  %p177_p4 = scmp.lt.s32.totalorder %s18_s13, %s18_s13 }
   0xb   :  { %p173_p3 = scmp.ne.s32.totalorder %s18_s13, %s172_s23  ;;  %p178_p5 = scmp.lt.s32.totalorder %s172_s23, %s172_s23 }
   0xd   :  { %p179_p6 = por %p178_p5, %p177_p4 }
   0xf   :  { %p180_p7 = pnand %p179_p6, %p173_p3 }
  0x11   :  { %183 = shalt.err (!%p180_p7)
}
  0x12   :  { %20 = dma.hbm_to_vmem [thread:$0]  %s307_s0, 128, %s18_s13, [#allocation3]  }
  0x13   :  { %s184_s28 = scalar_lea.hbm %s308_s1, 256 }
  0x14   :  { %p185_p8 = scmp.ne.s32.totalorder %s308_s1, %s184_s28  ;;  %p188_p9 = scmp.lt.u32.totalorder %s184_s28, %s308_s1 }
  0x16   :  { %p190_p10 = pnand %p188_p9, %p185_p8 }
  0x18   :  { %193 = shalt.err (!%p190_p10)
}
  0x19   :  { %s194_s6 = scalar_lea.vmem %s261_s15, 256  ;;  %p199_p12 = scmp.lt.s32.totalorder %s261_s15, %s261_s15 }
  0x1a   :  { %p195_p11 = scmp.ne.s32.totalorder %s261_s15, %s194_s6  ;;  %p200_p13 = scmp.lt.s32.totalorder %s194_s6, %s194_s6 }
  0x1c   :  { %p201_p0 = por %p200_p13, %p199_p12 }
  0x1e   :  { %p202_p1 = pnand %p201_p0, %p195_p11 }
  0x20   :  { %205 = shalt.err (!%p202_p1)
}
  0x21   :  { %s236_s0 = smov 64   ;;  %s237_s7 = smov 4  }
  0x22   :  { %32 = dma.hbm_to_vmem [thread:$0]  %s308_s1, 256, %s261_s15, [#allocation6], %s236_s0, %s236_s0, %s237_s7  }
  0x23   :  { %228 = dma.done.wait [#allocation3], 128  }
  0x24   :  { %229 = vsyncadd [#allocation3], 4294967168 }
  0x25   :  { %230 = dma.done.wait [#allocation6], 256  }
  0x26   :  { %231 = vsyncadd [#allocation6], 4294967040  ;;  %v238_v0 = vmov 0.0   ;;  %vm239_vm0 = vmmov 0   ;;  %v156_v1 = vld [vmem:[#allocation5] sm:$0xff]   ;;  %v157_v2 = vld [vmem:[#allocation5 + $0x8] sm:$0xff]  }
  0x27   :  { %141 = vmatprep.subr.bf16.mxu0 %v238_v0  ;;  %145 = vmatprep.mubr.msk.bf16.mxu0 %vm239_vm0, %v238_v0  ;;  %v42_v3 = vld [vmem:[#allocation2] sm:$0xff]  ;;  %vm67_vm1 = vcmask 261120   ;;  %s240_s1 = smov [#allocation7]  }
  0x28   :  { %142 = vmatpush3.bf16.msra.mxu0 %v156_v1  ;;  %v43_v4 = vpack.c.bf16 %v42_v3, %v42_v3  ;;  %v134_v5 = vld [vmem:[%s309_s2] ss:$0 sm:$0xff]  ;;  %s124_s12 = sshll.u32 %s240_s1, 4  ;;  %s125_s12 = int_to_ptr.vmem [resolvable:$true] %s124_s12 }
  0x29   :  { %143 = vmatprep.subr.bf16.mxu0 %v238_v0  ;;  %s206_s13 = scalar_lea.vmem %s125_s12, 128  ;;  %p211_p3 = scmp.lt.s32.totalorder %s125_s12, %s125_s12 }
  0x2a   :  { %p207_p2 = scmp.ne.s32.totalorder %s125_s12, %s206_s13  ;;  %p212_p4 = scmp.lt.s32.totalorder %s206_s13, %s206_s13 }
  0x2c   :  { %144 = vmatpush3.bf16.msra.mxu0 %v157_v2  ;;  %p213_p5 = por %p212_p4, %p211_p3 }
  0x2e   :  { %p214_p6 = pnand %p213_p5, %p207_p2 }
  0x2f   :  { %146 = vmatmul.mubr.msk.bf16.vlgmr.msra.gmra.mrb[0].mxu0 %vm67_vm1, %v43_v4 }
 0x102   :  { %v105_v6 = vpop.f32.mrb[0].mxu0 }
 0x103   :  { %v106_v7 = vadd.f32 %v134_v5, %v105_v6  ;;  %v147_v8 = vpop.f32.mrb[1].mxu0 }
 0x104   :  { %v108_v9 = vpop.f32.mrb[2].mxu0 }
 0x105   :  { %v111_v10 = vmul.f32 1.442695, %v106_v7  ;;  %v148_v11 = vpop.f32.mrb[3].mxu0 }
 0x107   :  { %158 = vpow2.f32 %v111_v10 }
 0x111   :  { %v159_v12 = vpop.eup %158 }
 0x112   :  { %113 = vadd.xlane.f32.xlu0 %v159_v12 }
 0x19f   :  { %v114_v13 = vpop.xlane.xlu0 %113 }
 0x1a0   :  { %160 = vrcp.f32 %v114_v13 }
 0x1aa   :  { %v161_v14 = vpop.eup %160 }
 0x1ab   :  { %v116_v15 = vmul.f32 %v161_v14, %v159_v12 }
 0x1ad   :  { %117 = vst [vmem:[#allocation7] sm:$0xff] %v116_v15 }
 0x1ae   :  { %217 = shalt.err (!%p214_p6)
}
 0x1af   :  { %s218_s15 = scalar_lea.hbm %s310_s3, 128 }
 0x1b0   :  { %p219_p7 = scmp.ne.s32.totalorder %s310_s3, %s218_s15  ;;  %p222_p8 = scmp.lt.u32.totalorder %s218_s15, %s310_s3 }
 0x1b2   :  { %p224_p9 = pnand %p222_p8, %p219_p7 }
 0x1b4   :  { %227 = shalt.err (!%p224_p9)
}
 0x1b5   :  { %127 = dma.vmem_to_hbm [thread:$0]  %s125_s12, 128, %s310_s3, [#allocation4]  }
 0x1b6   :  { %232 = dma.done.wait [#allocation4], 128  }
 0x1b7   :  { %233 = vsyncadd [#allocation4], 4294967168 }
 0x1b8   :  { %131 = vsyncpa [#allocation3], 1 }
 0x1b9   :  { %132 = vsyncpa [#allocation6], 1 }
 0x1ba   :  { %133 = vsyncpa [#allocation4], 1 }

</bundles_post_ra>
